<compile_context>
chip_gen: v7x
topology: tpu7x:2x2x1
jax: 0.10.0
libtpu: 0.0.40
codegen_flags: <defaults>
</compile_context>

<pallas_src>
import jax
import jax.numpy as jnp
from jax.experimental import pallas as pl
from jax.experimental.pallas import tpu as pltpu

_MAX_TILE_B = 16384                       # lane-axis batch columns per grid step
_STREAM_VMEM_BUDGET = 16 * 1024 * 1024    # bytes for double-buffered x^T / out tiles
_VMEM_LIMIT = 32 * 1024 * 1024            # safe scoped-VMEM limit on v5e/v6e/v7x


def _round_up(x, m):
    return (x + m - 1) // m * m


def _mish_fast(v):
    # mish(x) = x * tanh(softplus(x));  tanh(softplus(x)) = u/(u+2), u = t*(t+2), t = e^x.
    # Clamp before exp so the untaken where-branch is finite (no NaN leakage).
    vc = jnp.minimum(v, 20.0)
    t = jnp.exp(vc)
    u = t * (t + 2.0)
    d = u + 2.0
    r = pl.reciprocal(d, approx=True)     # EUP vrcp (~12 bits)
    r = r * (2.0 - d * r)                 # one Newton-Raphson step -> full f32 precision
    mish = v * u * r
    # For v > 20: softplus(v) == v (PyTorch threshold) and tanh(v) == 1 in f32.
    return jnp.where(v > 20.0, v, mish)


def _make_mlp_kernel(n_layers):
    """Kernel operating on the transposed chain: h^T = W @ x^T + b, all [d_out, tile_b]."""
    def kernel(*refs):
        x_ref, o_ref = refs[0], refs[-1]
        wb = refs[1:-1]
        h = x_ref[...].astype(jnp.float32)            # [d_in, tile_b]
        for l in range(n_layers):
            w = wb[2 * l][...]                        # [d_out, d_in]
            b = wb[2 * l + 1][...]                    # [d_out, 1] -> broadcasts over lanes
            h = jnp.dot(w, h, preferred_element_type=jnp.float32) + b
            h = _mish_fast(h)
        o_ref[...] = h.astype(o_ref.dtype)
    return kernel


def mlp_forward(x, params, *, max_tile_b=_MAX_TILE_B):
    """x: [B, D_in] float32.  params: list of (W [D_out, D_in], b [D_out, 1])."""
    B, d_in = x.shape
    out_dim = params[-1][0].shape[0]
    n_layers = len(params)

    # --- tile sizing: batch lives on the lane axis -> pad/tile in units of 128 ---
    b_pad = max(128, _round_up(B, 128))
    # VMEM budget for the streamed (double-buffered) x^T and out tiles.
    bytes_per_col = 2 * 4 * (d_in + out_dim)
    tile_cap = max(128, (_STREAM_VMEM_BUDGET // bytes_per_col) // 128 * 128)
    tile_b = min(max_tile_b, tile_cap, b_pad)
    # Guarantee >= 2 grid steps when possible so ("parallel",) can use v7x's 2 TCs.
    n_steps = pl.cdiv(b_pad, tile_b)
    if n_steps == 1 and b_pad >= 256:
        tile_b = _round_up(pl.cdiv(b_pad, 2), 128)
        n_steps = pl.cdiv(b_pad, tile_b)
    b_pad = n_steps * tile_b

    if b_pad != B:
        x = jnp.pad(x, ((0, b_pad - B), (0, 0)))
    xT = x.T                                          # [d_in, b_pad]  (layout plumbing)

    const2d = lambda i: (0, 0)
    in_specs = [pl.BlockSpec((d_in, tile_b), lambda i: (0, i))]   # streamed batch tile
    flat_wb = []
    for w, b in params:
        # Tiny (<= 32x32) -> VMEM-resident across all grid steps; default
        # double-buffering costs only a few KB so it is left as-is.
        in_specs.append(pl.BlockSpec(w.shape, const2d))
        in_specs.append(pl.BlockSpec(b.shape, const2d))
        flat_wb += [w, b]

    cost = pl.CostEstimate(
        flops=2 * b_pad * sum(w.shape[0] * w.shape[1] for w, _ in params),
        transcendentals=2 * b_pad * sum(w.shape[0] for w, _ in params),
        bytes_accessed=4 * (b_pad * (d_in + out_dim)
                            + sum(w.size + b.size for w, b in params)),
    )

    outT = pl.pallas_call(
        _make_mlp_kernel(n_layers),
        out_shape=jax.ShapeDtypeStruct((out_dim, b_pad), jnp.float32),
        grid=(n_steps,),
        in_specs=in_specs,
        out_specs=pl.BlockSpec((out_dim, tile_b), lambda i: (0, i)),
        compiler_params=pltpu.CompilerParams(
            dimension_semantics=("parallel",),        # shard batch grid across TCs
            vmem_limit_bytes=_VMEM_LIMIT,
        ),
        cost_estimate=cost,
    )(xT, *flat_wb)

    return outT.T[:B]                                 # un-transpose, drop batch padding


def init_params(key, input_dim, output_dim, num_neurons=(32, 32)):
    """Deterministic init mimicking nn.Linear default (uniform +/- 1/sqrt(fan_in)).

    Weights stored PyTorch-native [d_out, d_in]; biases [d_out, 1].
    """
    dims_in = [input_dim] + list(num_neurons)
    dims_out = list(num_neurons) + [output_dim]
    params = []
    for d_in, d_out in zip(dims_in, dims_out):
        key, kw, kb = jax.random.split(key, 3)
        bound = 1.0 / jnp.sqrt(d_in)
        w = jax.random.uniform(kw, (d_out, d_in), jnp.float32, -bound, bound)
        b = jax.random.uniform(kb, (d_out, 1), jnp.float32, -bound, bound)
        params.append((w, b))
    return params


def _mish_ref(v):
    # PyTorch-style Mish: x * tanh(softplus(x)), softplus threshold=20.
    sp = jnp.where(v > 20.0, v, jnp.log1p(jnp.exp(jnp.minimum(v, 20.0))))
    return v * jnp.tanh(sp)


def mlp_reference(x, params):
    """Pure-JAX reference for correctness checking."""
    h = x
    for w, b in params:
        h = _mish_ref(h @ w.T + b[:, 0])
    return h


if __name__ == "__main__":
    key = jax.random.PRNGKey(0)
    k_x, k_p = jax.random.split(key)

    batch, input_dim, output_dim = 8, 16, 8
    x = jax.random.normal(k_x, (batch, input_dim), jnp.float32)
    params = init_params(k_p, input_dim, output_dim, num_neurons=(32, 32))

    out = jax.block_until_ready(mlp_forward(x, params))

    ref = mlp_reference(x, params)
    assert out.shape == (batch, output_dim)
    assert jnp.allclose(out, ref, atol=1e-5, rtol=1e-5), "mismatch vs reference"

    print("KERNEL_OK")
</pallas_src>

<mosaic_0001>
module attributes {stable_mosaic.version = 11 : i64} {
  func.func @kernel(%arg0: i32, %arg1: memref<16x128xf32, #tpu.memory_space<vmem>>, %arg2: memref<32x16xf32, #tpu.memory_space<vmem>>, %arg3: memref<32x1xf32, #tpu.memory_space<vmem>>, %arg4: memref<32x32xf32, #tpu.memory_space<vmem>>, %arg5: memref<32x1xf32, #tpu.memory_space<vmem>>, %arg6: memref<8x32xf32, #tpu.memory_space<vmem>>, %arg7: memref<8x1xf32, #tpu.memory_space<vmem>>, %arg8: memref<8x128xf32, #tpu.memory_space<vmem>>) attributes {dimension_semantics = [#tpu.dimension_semantics<parallel>], iteration_bounds = array<i64: 1>, scalar_prefetch = 0 : i64, scratch_operands = 0 : i64, tpu.core_type = #tpu.core_type<tc>, window_params = [{transform_indices = @transform_0, window_bounds = array<i64: 16, 128>}, {pipeline_mode = #tpu.pipeline_mode<synchronous>, transform_indices = @transform_1, window_bounds = array<i64: 32, 16>}, {pipeline_mode = #tpu.pipeline_mode<synchronous>, transform_indices = @transform_2, window_bounds = array<i64: 32, 1>}, {pipeline_mode = #tpu.pipeline_mode<synchronous>, transform_indices = @transform_3, window_bounds = array<i64: 32, 32>}, {pipeline_mode = #tpu.pipeline_mode<synchronous>, transform_indices = @transform_4, window_bounds = array<i64: 32, 1>}, {pipeline_mode = #tpu.pipeline_mode<synchronous>, transform_indices = @transform_5, window_bounds = array<i64: 8, 32>}, {pipeline_mode = #tpu.pipeline_mode<synchronous>, transform_indices = @transform_6, window_bounds = array<i64: 8, 1>}, {transform_indices = @transform_7, window_bounds = array<i64: 8, 128>}]} {
    %c0 = arith.constant 0 : index
    %c0_0 = arith.constant 0 : index
    %0 = vector.load %arg1[%c0, %c0_0] : memref<16x128xf32, #tpu.memory_space<vmem>>, vector<16x128xf32>
    %c0_1 = arith.constant 0 : index
    %c0_2 = arith.constant 0 : index
    %1 = vector.load %arg2[%c0_1, %c0_2] : memref<32x16xf32, #tpu.memory_space<vmem>>, vector<32x16xf32>
    %c0_3 = arith.constant 0 : index
    %c0_4 = arith.constant 0 : index
    %2 = vector.load %arg3[%c0_3, %c0_4] : memref<32x1xf32, #tpu.memory_space<vmem>>, vector<32x1xf32>
    %cst = arith.constant dense<0.000000e+00> : vector<32x128xf32>
    %3 = tpu.matmul %1, %0, %cst {dimension_numbers = #tpu.dot_dimension_numbers<[1], [0], [0], [1], [0, 0, 1, 1], [], []>} : vector<32x16xf32>, vector<16x128xf32>, vector<32x128xf32> -> vector<32x128xf32>
    %4 = vector.broadcast %2 : vector<32x1xf32> to vector<32x128xf32>
    %5 = arith.addf %3, %4 : vector<32x128xf32>
    %cst_5 = arith.constant 2.000000e+01 : f32
    %6 = vector.broadcast %cst_5 : f32 to vector<32x128xf32>
    %7 = arith.minimumf %5, %6 : vector<32x128xf32>
    %8 = math.exp %7 : vector<32x128xf32>
    %cst_6 = arith.constant 2.000000e+00 : f32
    %9 = vector.broadcast %cst_6 : f32 to vector<32x128xf32>
    %10 = arith.addf %8, %9 : vector<32x128xf32>
    %11 = arith.mulf %8, %10 : vector<32x128xf32>
    %cst_7 = arith.constant 2.000000e+00 : f32
    %12 = vector.broadcast %cst_7 : f32 to vector<32x128xf32>
    %13 = arith.addf %11, %12 : vector<32x128xf32>
    %14 = tpu.reciprocal %13 {approx = true} : vector<32x128xf32> -> vector<32x128xf32>
    %15 = arith.mulf %13, %14 : vector<32x128xf32>
    %cst_8 = arith.constant 2.000000e+00 : f32
    %16 = vector.broadcast %cst_8 : f32 to vector<32x128xf32>
    %17 = arith.subf %16, %15 : vector<32x128xf32>
    %18 = arith.mulf %14, %17 : vector<32x128xf32>
    %19 = arith.mulf %5, %11 : vector<32x128xf32>
    %20 = arith.mulf %19, %18 : vector<32x128xf32>
    %cst_9 = arith.constant 2.000000e+01 : f32
    %21 = vector.broadcast %cst_9 : f32 to vector<32x128xf32>
    %22 = arith.cmpf ogt, %5, %21 : vector<32x128xf32>
    %23 = arith.select %22, %5, %20 : vector<32x128xi1>, vector<32x128xf32>
    %c0_10 = arith.constant 0 : index
    %c0_11 = arith.constant 0 : index
    %24 = vector.load %arg4[%c0_10, %c0_11] : memref<32x32xf32, #tpu.memory_space<vmem>>, vector<32x32xf32>
    %c0_12 = arith.constant 0 : index
    %c0_13 = arith.constant 0 : index
    %25 = vector.load %arg5[%c0_12, %c0_13] : memref<32x1xf32, #tpu.memory_space<vmem>>, vector<32x1xf32>
    %cst_14 = arith.constant dense<0.000000e+00> : vector<32x128xf32>
    %26 = tpu.matmul %24, %23, %cst_14 {dimension_numbers = #tpu.dot_dimension_numbers<[1], [0], [0], [1], [0, 0, 1, 1], [], []>} : vector<32x32xf32>, vector<32x128xf32>, vector<32x128xf32> -> vector<32x128xf32>
    %27 = vector.broadcast %25 : vector<32x1xf32> to vector<32x128xf32>
    %28 = arith.addf %26, %27 : vector<32x128xf32>
    %cst_15 = arith.constant 2.000000e+01 : f32
    %29 = vector.broadcast %cst_15 : f32 to vector<32x128xf32>
    %30 = arith.minimumf %28, %29 : vector<32x128xf32>
    %31 = math.exp %30 : vector<32x128xf32>
    %cst_16 = arith.constant 2.000000e+00 : f32
    %32 = vector.broadcast %cst_16 : f32 to vector<32x128xf32>
    %33 = arith.addf %31, %32 : vector<32x128xf32>
    %34 = arith.mulf %31, %33 : vector<32x128xf32>
    %cst_17 = arith.constant 2.000000e+00 : f32
    %35 = vector.broadcast %cst_17 : f32 to vector<32x128xf32>
    %36 = arith.addf %34, %35 : vector<32x128xf32>
    %37 = tpu.reciprocal %36 {approx = true} : vector<32x128xf32> -> vector<32x128xf32>
    %38 = arith.mulf %36, %37 : vector<32x128xf32>
    %cst_18 = arith.constant 2.000000e+00 : f32
    %39 = vector.broadcast %cst_18 : f32 to vector<32x128xf32>
    %40 = arith.subf %39, %38 : vector<32x128xf32>
    %41 = arith.mulf %37, %40 : vector<32x128xf32>
    %42 = arith.mulf %28, %34 : vector<32x128xf32>
    %43 = arith.mulf %42, %41 : vector<32x128xf32>
    %cst_19 = arith.constant 2.000000e+01 : f32
    %44 = vector.broadcast %cst_19 : f32 to vector<32x128xf32>
    %45 = arith.cmpf ogt, %28, %44 : vector<32x128xf32>
    %46 = arith.select %45, %28, %43 : vector<32x128xi1>, vector<32x128xf32>
    %c0_20 = arith.constant 0 : index
    %c0_21 = arith.constant 0 : index
    %47 = vector.load %arg6[%c0_20, %c0_21] : memref<8x32xf32, #tpu.memory_space<vmem>>, vector<8x32xf32>
    %c0_22 = arith.constant 0 : index
    %c0_23 = arith.constant 0 : index
    %48 = vector.load %arg7[%c0_22, %c0_23] : memref<8x1xf32, #tpu.memory_space<vmem>>, vector<8x1xf32>
    %cst_24 = arith.constant dense<0.000000e+00> : vector<8x128xf32>
    %49 = tpu.matmul %47, %46, %cst_24 {dimension_numbers = #tpu.dot_dimension_numbers<[1], [0], [0], [1], [0, 0, 1, 1], [], []>} : vector<8x32xf32>, vector<32x128xf32>, vector<8x128xf32> -> vector<8x128xf32>
    %50 = vector.broadcast %48 : vector<8x1xf32> to vector<8x128xf32>
    %51 = arith.addf %49, %50 : vector<8x128xf32>
    %cst_25 = arith.constant 2.000000e+01 : f32
    %52 = vector.broadcast %cst_25 : f32 to vector<8x128xf32>
    %53 = arith.minimumf %51, %52 : vector<8x128xf32>
    %54 = math.exp %53 : vector<8x128xf32>
    %cst_26 = arith.constant 2.000000e+00 : f32
    %55 = vector.broadcast %cst_26 : f32 to vector<8x128xf32>
    %56 = arith.addf %54, %55 : vector<8x128xf32>
    %57 = arith.mulf %54, %56 : vector<8x128xf32>
    %cst_27 = arith.constant 2.000000e+00 : f32
    %58 = vector.broadcast %cst_27 : f32 to vector<8x128xf32>
    %59 = arith.addf %57, %58 : vector<8x128xf32>
    %60 = tpu.reciprocal %59 {approx = true} : vector<8x128xf32> -> vector<8x128xf32>
    %61 = arith.mulf %59, %60 : vector<8x128xf32>
    %cst_28 = arith.constant 2.000000e+00 : f32
    %62 = vector.broadcast %cst_28 : f32 to vector<8x128xf32>
    %63 = arith.subf %62, %61 : vector<8x128xf32>
    %64 = arith.mulf %60, %63 : vector<8x128xf32>
    %65 = arith.mulf %51, %57 : vector<8x128xf32>
    %66 = arith.mulf %65, %64 : vector<8x128xf32>
    %cst_29 = arith.constant 2.000000e+01 : f32
    %67 = vector.broadcast %cst_29 : f32 to vector<8x128xf32>
    %68 = arith.cmpf ogt, %51, %67 : vector<8x128xf32>
    %69 = arith.select %68, %51, %66 : vector<8x128xi1>, vector<8x128xf32>
    %c0_30 = arith.constant 0 : index
    %c0_31 = arith.constant 0 : index
    %70 = vector.load %arg8[%c0_30, %c0_31] : memref<8x128xf32, #tpu.memory_space<vmem>>, vector<8x128xf32>
    tpu.vector_store %arg8[%c0_30, %c0_31], %69 {strides = array<i32>} : memref<8x128xf32, #tpu.memory_space<vmem>>, vector<8x128xf32>,
    return
  }
  func.func @transform_0(%arg0: i32) -> (i32, i32) {
    %c0_i32 = arith.constant 0 : i32
    %c0_i32_0 = arith.constant 0 : i32
    return %c0_i32, %arg0 : i32, i32
  }
  func.func @transform_1(%arg0: i32) -> (i32, i32) {
    %c0_i32 = arith.constant 0 : i32
    %c0_i32_0 = arith.constant 0 : i32
    %c0_i32_1 = arith.constant 0 : i32
    return %c0_i32, %c0_i32_0 : i32, i32
  }
  func.func @transform_2(%arg0: i32) -> (i32, i32) {
    %c0_i32 = arith.constant 0 : i32
    %c0_i32_0 = arith.constant 0 : i32
    %c0_i32_1 = arith.constant 0 : i32
    return %c0_i32, %c0_i32_0 : i32, i32
  }
  func.func @transform_3(%arg0: i32) -> (i32, i32) {
    %c0_i32 = arith.constant 0 : i32
    %c0_i32_0 = arith.constant 0 : i32
    %c0_i32_1 = arith.constant 0 : i32
    return %c0_i32, %c0_i32_0 : i32, i32
  }
  func.func @transform_4(%arg0: i32) -> (i32, i32) {
    %c0_i32 = arith.constant 0 : i32
    %c0_i32_0 = arith.constant 0 : i32
    %c0_i32_1 = arith.constant 0 : i32
    return %c0_i32, %c0_i32_0 : i32, i32
  }
  func.func @transform_5(%arg0: i32) -> (i32, i32) {
    %c0_i32 = arith.constant 0 : i32
    %c0_i32_0 = arith.constant 0 : i32
    %c0_i32_1 = arith.constant 0 : i32
    return %c0_i32, %c0_i32_0 : i32, i32
  }
  func.func @transform_6(%arg0: i32) -> (i32, i32) {
    %c0_i32 = arith.constant 0 : i32
    %c0_i32_0 = arith.constant 0 : i32
    %c0_i32_1 = arith.constant 0 : i32
    return %c0_i32, %c0_i32_0 : i32, i32
  }
  func.func @transform_7(%arg0: i32) -> (i32, i32) {
    %c0_i32 = arith.constant 0 : i32
    %c0_i32_0 = arith.constant 0 : i32
    return %c0_i32, %arg0 : i32, i32
  }
}

</mosaic_0001>

<bundles_post_ra>
// kernel: tpu_custom_call.1
= control target key start
LH: loop header
LB: loop body
LE: loop exit
PB: predicated region body
PF: predicated region fallthrough
CT: control target
= control target key end

     0   :  { %vm57_vm0 = vcmask 130048   ;;  %v650_v4 = vmov 0   ;;  %s820_s0 = inlined_call_operand.vmem [shape: f32[16,128], index: 0, kind: input, shape index: {}]   ;;  %s821_s1 = inlined_call_operand.vmem [shape: f32[32,16], index: 1, kind: input, shape index: {}]   ;;  %s822_s2 = inlined_call_operand.vmem [shape: f32[32,1], index: 2, kind: input, shape index: {}]   ;;  %s823_s3 = inlined_call_operand.vmem [shape: f32[32,32], index: 3, kind: input, shape index: {}]   ;;  %s824_s4 = inlined_call_operand.vmem [shape: f32[32,1], index: 4, kind: input, shape index: {}]   ;;  %s825_s5 = inlined_call_operand.vmem [shape: f32[8,32], index: 5, kind: input, shape index: {}]   ;;  %s826_s6 = inlined_call_operand.vmem [shape: f32[8,1], index: 6, kind: input, shape index: {}]   ;;  %s827_s7 = inlined_call_operand.hbm [shape: f32[8,128], index: 7, kind: output, shape index: {}]  }
   0x1   :  { %v27_v0 = vld [vmem:[%s820_s0] sm:$0xff]  ;;  %v28_v1 = vld [vmem:[%s820_s0 + $0x8] sm:$0xff]  ;;  %588 = vset.pattern.permute.xlu0 %v650_v4  ;;  %589 = vset.pattern.permute.xlu1 %v650_v4  ;;  %v35_v6 = vld [vmem:[%s822_s2 + $0x10] sm:$0xff] }
   0x2   :  { %v29_v2 = vld [vmem:[%s821_s1] sm:$0xff]  ;;  %v565_v3 = vpack.c.bf16 %v28_v1, %v27_v0  ;;  %v30_v7 = vld [vmem:[%s821_s1 + $0x8] sm:$0xff]  ;;  %49 = vperm.xlu1 %589, %v35_v6   ;;  %v31_v9 = vld [vmem:[%s821_s1 + $0x10] sm:$0xff] }
   0x3   :  { %534 = vmatprep.mubr.msk.f32.mxu0 %vm57_vm0, %v29_v2  ;;  %v33_v5 = vld [vmem:[%s822_s2] sm:$0xff]  ;;  %v34_v8 = vld [vmem:[%s822_s2 + $0x8] sm:$0xff]  ;;  %v36_v10 = vld [vmem:[%s822_s2 + $0x18] sm:$0xff] }
   0x4   :  { %566 = vmatprep.subr.bf16.mxu0 %v565_v3  ;;  %39 = vperm.xlu0 %588, %v33_v5  }
   0x5   :  { %568 = vmatpush3.bf16.msra.mxu0 %v565_v3 }
   0x6   :  { %12 = vsyncpa [#allocation3], 0  ;;  %v32_v11 = vld [vmem:[%s821_s1 + $0x18] sm:$0xff]  ;;  %v215_v12 = vld [vmem:[%s824_s4] sm:$0xff]  ;;  %54 = vperm.xlu1 %589, %v36_v10   ;;  %vm239_vm1 = vcmask 261120   ;;  %vm652_vm6 = vmmov 0  }
   0x7   :  { %v216_v13 = vld [vmem:[%s824_s4 + $0x8] sm:$0xff]  ;;  %v217_v14 = vld [vmem:[%s824_s4 + $0x10] sm:$0xff]  ;;  %v218_v15 = vld [vmem:[%s824_s4 + $0x18] sm:$0xff] }
   0x8   :  { %535 = vmatmul.mubr.msk.f32.vlgmr.msra.gmra.mrb[0].mxu0 %vm57_vm0, %v30_v7  ;;  %44 = vperm.xlu0 %588, %v34_v8   ;;  %v394_v16 = vld [vmem:[%s826_s6] sm:$0xff] }
   0x9   :  { %537 = vmatprep.mubr.msk.f32.mxu0 %vm57_vm0, %v31_v9  ;;  %v211_v17 = vld [vmem:[%s823_s3] sm:$0xff] }
   0xa   :  { %226 = vperm.xlu1 %589, %v216_v13   ;;  %548 = vmatprep.mubr.msk.f32.mxu1 %vm239_vm1, %v211_v17 }
   0xc   :  { %538 = vmatmul.mubr.msk.f32.gmra.mrb[2].mxu0 %vm57_vm0, %v32_v11  ;;  %221 = vperm.xlu0 %588, %v215_v12  }
   0xe   :  { %236 = vperm.xlu1 %589, %v218_v15  }
  0x10   :  { %231 = vperm.xlu0 %588, %v217_v14  }
  0x14   :  { %397 = vperm.xlu0 %588, %v394_v16  }
  0x81   :  { %v50_v19 = vpop.permute.xlu1 %49 }
  0x83   :  { %v40_v18 = vpop.permute.xlu0 %39 }
  0x85   :  { %v55_v26 = vpop.permute.xlu1 %54 }
  0x87   :  { %v45_v20 = vpop.permute.xlu0 %44 }
  0xdb   :  { %v536_v21 = vpop.f32.mrb[0].mxu0 }
  0xdc   :  { %v142_v22 = vadd.f32 %v536_v21, %v45_v20  ;;  %v136_v23 = vpop.f32.mrb[1].mxu0  ;;  %v212_v20 = vld [vmem:[%s823_s3 + $0x8] sm:$0xff]  ;;  %v213_v21 = vld [vmem:[%s823_s3 + $0x10] sm:$0xff] }
  0xdd   :  { %v748_v24 = vadd.f32 %v136_v23, %v40_v18  ;;  %v651_v23 = vmov 0.0|0.0  }
  0xde   :  { %v156_v25 = vmin.f32 %v142_v22, 20.0  ;;  %vm204_vm2 = vcmp.gt.f32.partialorder %v142_v22, 20.0  ;;  %577 = vmatprep.subr.bf16.mxu0 %v651_v23 }
  0xdf   :  { %v155_v27 = vmin.f32 %v748_v24, 20.0  ;;  %v539_v28 = vpop.f32.mrb[2].mxu0  ;;  %vm203_vm3 = vcmp.gt.f32.partialorder %v748_v24, 20.0 }
  0xe0   :  { %v161_v29 = vmul.f32 1.442695, %v156_v25  ;;  %v751_v30 = vadd.f32 %v539_v28, %v55_v26  ;;  %v146_v31 = vpop.f32.mrb[3].mxu0  ;;  %v227_v25 = vpop.permute.xlu1 %226 }
  0xe1   :  { %v159_v32 = vmul.f32 1.442695, %v155_v27  ;;  %v753_v33 = vadd.f32 %v146_v31, %v50_v19  ;;  %v222_v26 = vpop.permute.xlu0 %221 }
  0xe2   :  { %590 = vpow2.f32 %v161_v29  ;;  %v158_v34 = vmin.f32 %v751_v30, 20.0  ;;  %vm206_vm4 = vcmp.gt.f32.partialorder %v751_v30, 20.0 }
  0xe3   :  { %592 = vpow2.f32 %v159_v32  ;;  %v157_v35 = vmin.f32 %v753_v33, 20.0  ;;  %vm205_vm5 = vcmp.gt.f32.partialorder %v753_v33, 20.0 }
  0xe4   :  { %v165_v36 = vmul.f32 1.442695, %v158_v34  ;;  %v237_v32 = vpop.permute.xlu1 %236 }
  0xe5   :  { %v163_v37 = vmul.f32 1.442695, %v157_v35  ;;  %v232_v35 = vpop.permute.xlu0 %231 }
  0xe6   :  { %594 = vpow2.f32 %v165_v36 }
  0xe7   :  { %596 = vpow2.f32 %v163_v37 }
  0xec   :  { %v591_v38 = vpop.eup %590 }
  0xed   :  { %v593_v39 = vpop.eup %592  ;;  %v168_v40 = vadd.f32 2.0, %v591_v38 }
  0xee   :  { %v167_v41 = vadd.f32 2.0, %v593_v39 }
  0xef   :  { %v172_v42 = vmul.f32 %v591_v38, %v168_v40 }
  0xf0   :  { %v595_v43 = vpop.eup %594  ;;  %v171_v44 = vmul.f32 %v593_v39, %v167_v41 }
  0xf1   :  { %v597_v45 = vpop.eup %596  ;;  %v176_v46 = vadd.f32 2.0, %v172_v42  ;;  %v170_v47 = vadd.f32 2.0, %v595_v43  ;;  %v196_v62 = vmul.f32 %v172_v42, %v142_v22 }
  0xf2   :  { %v175_v48 = vadd.f32 2.0, %v171_v44  ;;  %v169_v49 = vadd.f32 2.0, %v597_v45  ;;  %v195_v1 = vmul.f32 %v171_v44, %v748_v24 }
  0xf3   :  { %598 = vrcp.f32 %v176_v46  ;;  %v174_v50 = vmul.f32 %v595_v43, %v170_v47 }
  0xf4   :  { %600 = vrcp.f32 %v175_v48  ;;  %v173_v51 = vmul.f32 %v597_v45, %v169_v49 }
  0xf5   :  { %v178_v52 = vadd.f32 2.0, %v174_v50  ;;  %v198_v8 = vmul.f32 %v174_v50, %v751_v30 }
  0xf6   :  { %v177_v53 = vadd.f32 2.0, %v173_v51  ;;  %v197_v11 = vmul.f32 %v173_v51, %v753_v33 }
  0xf7   :  { %602 = vrcp.f32 %v178_v52 }
  0xf8   :  { %604 = vrcp.f32 %v177_v53 }
  0xfd   :  { %v599_v54 = vpop.eup %598 }
  0xfe   :  { %v601_v55 = vpop.eup %600  ;;  %v184_v56 = vmul.f32 %v599_v54, %v176_v46 }
  0xff   :  { %v183_v57 = vmul.f32 %v601_v55, %v175_v48 }
 0x100   :  { %v188_v58 = vsub.f32 2.0, %v184_v56 }
 0x101   :  { %v603_v59 = vpop.eup %602  ;;  %v187_v60 = vsub.f32 2.0, %v183_v57 }
 0x102   :  { %v605_v61 = vpop.eup %604  ;;  %v192_v63 = vmul.f32 %v599_v54, %v188_v58  ;;  %v186_v0 = vmul.f32 %v603_v59, %v178_v52 }
 0x103   :  { %v191_v2 = vmul.f32 %v601_v55, %v187_v60  ;;  %v185_v3 = vmul.f32 %v605_v61, %v177_v53 }
 0x104   :  { %v200_v4 = vmul.f32 %v196_v62, %v192_v63  ;;  %v190_v5 = vsub.f32 2.0, %v186_v0 }
 0x105   :  { %v199_v6 = vmul.f32 %v195_v1, %v191_v2  ;;  %v189_v7 = vsub.f32 2.0, %v185_v3 }
 0x106   :  { %v208_v9 = vsel %vm204_vm2, %v142_v22, %v200_v4  ;;  %v194_v10 = vmul.f32 %v603_v59, %v190_v5  ;;  %v214_v22 = vld [vmem:[%s823_s3 + $0x18] sm:$0xff] }
 0x107   :  { %v207_v12 = vsel %vm203_vm3, %v748_v24, %v199_v6  ;;  %v193_v13 = vmul.f32 %v605_v61, %v189_v7  ;;  %v653_v24 = vmov 0.0  }
 0x108   :  { %v569_v14 = vpack.c.bf16 %v208_v9, %v207_v12  ;;  %v202_v15 = vmul.f32 %v198_v8, %v194_v10  ;;  %562 = vmatprep.mubr.msk.f32.mxu0 %vm652_vm6, %v653_v24 }
 0x109   :  { %v201_v16 = vmul.f32 %v197_v11, %v193_v13 }
 0x10a   :  { %570 = vmatprep.subr.bf16.mxu1 %v569_v14  ;;  %v210_v17 = vsel %vm206_vm4, %v751_v30, %v202_v15 }
 0x10b   :  { %572 = vmatpush3.bf16.msra.mxu1 %v569_v14  ;;  %v209_v18 = vsel %vm205_vm5, %v753_v33, %v201_v16 }
 0x10c   :  { %v573_v19 = vpack.c.bf16 %v210_v17, %v209_v18 }
 0x10e   :  { %574 = vmatprep.subr.bf16.mxu1 %v573_v19 }
 0x10f   :  { %576 = vmatpush3.bf16.msra.mxu1 %v573_v19 }
 0x112   :  { %549 = vmatmul.mubr.msk.f32.vlgmr.msra.gmra.mrb[0].mxu1 %vm239_vm1, %v212_v20 }
 0x113   :  { %551 = vmatprep.mubr.msk.f32.mxu1 %vm239_vm1, %v213_v21 }
 0x116   :  { %552 = vmatmul.mubr.msk.f32.gmra.mrb[2].mxu1 %vm239_vm1, %v214_v22 }
 0x1e5   :  { %v550_v27 = vpop.f32.mrb[0].mxu1 }
 0x1e6   :  { %v779_v28 = vadd.f32 %v550_v27, %v227_v25  ;;  %v318_v29 = vpop.f32.mrb[1].mxu1 }
 0x1e7   :  { %v781_v30 = vadd.f32 %v318_v29, %v222_v26  ;;  %v398_v29 = vpop.permute.xlu0 %397 }
 0x1e8   :  { %v338_v31 = vmin.f32 %v779_v28, 20.0  ;;  %vm386_vm7 = vcmp.gt.f32.partialorder %v779_v28, 20.0 }
 0x1e9   :  { %v337_v33 = vmin.f32 %v781_v30, 20.0  ;;  %v553_v34 = vpop.f32.mrb[2].mxu1  ;;  %vm385_vm8 = vcmp.gt.f32.partialorder %v781_v30, 20.0 }
 0x1ea   :  { %v343_v36 = vmul.f32 1.442695, %v338_v31  ;;  %v785_v37 = vadd.f32 %v553_v34, %v237_v32  ;;  %v328_v38 = vpop.f32.mrb[3].mxu1 }
 0x1eb   :  { %v341_v39 = vmul.f32 1.442695, %v337_v33  ;;  %v787_v40 = vadd.f32 %v328_v38, %v232_v35 }
 0x1ec   :  { %606 = vpow2.f32 %v343_v36  ;;  %v340_v41 = vmin.f32 %v785_v37, 20.0  ;;  %vm388_vm9 = vcmp.gt.f32.partialorder %v785_v37, 20.0 }
 0x1ed   :  { %608 = vpow2.f32 %v341_v39  ;;  %v339_v42 = vmin.f32 %v787_v40, 20.0  ;;  %vm387_vm10 = vcmp.gt.f32.partialorder %v787_v40, 20.0 }
 0x1ee   :  { %v347_v43 = vmul.f32 1.442695, %v340_v41 }
 0x1ef   :  { %v345_v44 = vmul.f32 1.442695, %v339_v42 }
 0x1f0   :  { %610 = vpow2.f32 %v347_v43 }
 0x1f1   :  { %612 = vpow2.f32 %v345_v44 }
 0x1f6   :  { %v607_v45 = vpop.eup %606 }
 0x1f7   :  { %v609_v46 = vpop.eup %608  ;;  %v350_v47 = vadd.f32 2.0, %v607_v45 }
 0x1f8   :  { %v349_v48 = vadd.f32 2.0, %v609_v46 }
 0x1f9   :  { %v354_v49 = vmul.f32 %v607_v45, %v350_v47 }
 0x1fa   :  { %v611_v50 = vpop.eup %610  ;;  %v353_v51 = vmul.f32 %v609_v46, %v349_v48 }
 0x1fb   :  { %v613_v52 = vpop.eup %612  ;;  %v358_v53 = vadd.f32 2.0, %v354_v49  ;;  %v352_v54 = vadd.f32 2.0, %v611_v50  ;;  %v378_v6 = vmul.f32 %v354_v49, %v779_v28 }
 0x1fc   :  { %v357_v55 = vadd.f32 2.0, %v353_v51  ;;  %v351_v56 = vadd.f32 2.0, %v613_v52  ;;  %v377_v9 = vmul.f32 %v353_v51, %v781_v30 }
 0x1fd   :  { %614 = vrcp.f32 %v358_v53  ;;  %v356_v57 = vmul.f32 %v611_v50, %v352_v54 }
 0x1fe   :  { %616 = vrcp.f32 %v357_v55  ;;  %v355_v58 = vmul.f32 %v613_v52, %v351_v56 }
 0x1ff   :  { %v360_v59 = vadd.f32 2.0, %v356_v57  ;;  %v380_v16 = vmul.f32 %v356_v57, %v785_v37 }
 0x200   :  { %v359_v60 = vadd.f32 2.0, %v355_v58  ;;  %v379_v19 = vmul.f32 %v355_v58, %v787_v40 }
 0x201   :  { %618 = vrcp.f32 %v360_v59 }
 0x202   :  { %620 = vrcp.f32 %v359_v60 }
 0x207   :  { %v615_v61 = vpop.eup %614 }
 0x208   :  { %v617_v62 = vpop.eup %616  ;;  %v366_v63 = vmul.f32 %v615_v61, %v358_v53 }
 0x209   :  { %v365_v0 = vmul.f32 %v617_v62, %v357_v55 }
 0x20a   :  { %v370_v1 = vsub.f32 2.0, %v366_v63 }
 0x20b   :  { %v619_v2 = vpop.eup %618  ;;  %v369_v3 = vsub.f32 2.0, %v365_v0 }
 0x20c   :  { %v621_v4 = vpop.eup %620  ;;  %v374_v5 = vmul.f32 %v615_v61, %v370_v1  ;;  %v368_v7 = vmul.f32 %v619_v2, %v360_v59 }
 0x20d   :  { %v373_v8 = vmul.f32 %v617_v62, %v369_v3  ;;  %v367_v10 = vmul.f32 %v621_v4, %v359_v60 }
 0x20e   :  { %v382_v11 = vmul.f32 %v378_v6, %v374_v5  ;;  %v372_v12 = vsub.f32 2.0, %v368_v7 }
 0x20f   :  { %v381_v13 = vmul.f32 %v377_v9, %v373_v8  ;;  %v371_v14 = vsub.f32 2.0, %v367_v10 }
 0x210   :  { %v376_v15 = vmul.f32 %v619_v2, %v372_v12  ;;  %v390_v17 = vsel %vm386_vm7, %v779_v28, %v382_v11  ;;  %v393_v28 = vld [vmem:[%s825_s5] sm:$0xff]  ;;  %s654_s5 = smov [#allocation2]  }
 0x211   :  { %v375_v18 = vmul.f32 %v621_v4, %v371_v14  ;;  %v389_v20 = vsel %vm385_vm8, %v781_v30, %v381_v13  ;;  %s494_s11 = sshll.u32 %s654_s5, 4  ;;  %s495_s11 = int_to_ptr.vmem [resolvable:$true] %s494_s11 }
 0x212   :  { %v384_v21 = vmul.f32 %v380_v16, %v376_v15  ;;  %v578_v22 = vpack.c.bf16 %v390_v17, %v389_v20  ;;  %s626_s12 = scalar_lea.vmem %s495_s11, 128  ;;  %p631_p1 = scmp.lt.s32.totalorder %s495_s11, %s495_s11 }
 0x213   :  { %v383_v24 = vmul.f32 %v379_v19, %v375_v18  ;;  %p627_p0 = scmp.ne.s32.totalorder %s495_s11, %s626_s12  ;;  %p632_p2 = scmp.lt.s32.totalorder %s626_s12, %s626_s12 }
 0x214   :  { %579 = vmatpush3.bf16.msra.mxu0 %v578_v22  ;;  %v392_v25 = vsel %vm388_vm9, %v785_v37, %v384_v21 }
 0x215   :  { %580 = vmatprep.subr.bf16.mxu0 %v651_v23  ;;  %v391_v26 = vsel %vm387_vm10, %v787_v40, %v383_v24  ;;  %p633_p3 = por %p632_p2, %p631_p1 }
 0x216   :  { %v581_v27 = vpack.c.bf16 %v392_v25, %v391_v26 }
 0x217   :  { %p634_p4 = pnand %p633_p3, %p627_p0 }
 0x218   :  { %582 = vmatpush3.bf16.msra.mxu0 %v581_v27 }
 0x21b   :  { %563 = vmatmul.mubr.msk.f32.vlgmr.msra.gmra.mrb[4].mxu0 %vm239_vm1, %v393_v28 }
 0x2ee   :  { %v469_v30 = vpop.f32.mrb[4].mxu0 }
 0x2ef   :  { %v470_v31 = vadd.f32 %v469_v30, %v398_v29  ;;  %v564_v32 = vpop.f32.mrb[5].mxu0 }
 0x2f1   :  { %v473_v33 = vmin.f32 %v470_v31, 20.0  ;;  %vm485_vm11 = vcmp.gt.f32.partialorder %v470_v31, 20.0 }
 0x2f3   :  { %v474_v34 = vmul.f32 1.442695, %v473_v33 }
 0x2f5   :  { %622 = vpow2.f32 %v474_v34 }
 0x2ff   :  { %v623_v35 = vpop.eup %622 }
 0x300   :  { %v476_v36 = vadd.f32 2.0, %v623_v35 }
 0x302   :  { %v477_v23 = vmul.f32 %v623_v35, %v476_v36 }
 0x304   :  { %v478_v37 = vadd.f32 2.0, %v477_v23  ;;  %v483_v42 = vmul.f32 %v477_v23, %v470_v31 }
 0x306   :  { %624 = vrcp.f32 %v478_v37 }
 0x310   :  { %v625_v38 = vpop.eup %624 }
 0x311   :  { %v480_v39 = vmul.f32 %v625_v38, %v478_v37 }
 0x313   :  { %v481_v40 = vsub.f32 2.0, %v480_v39 }
 0x315   :  { %v482_v41 = vmul.f32 %v625_v38, %v481_v40 }
 0x317   :  { %v484_v43 = vmul.f32 %v483_v42, %v482_v41 }
 0x319   :  { %v486_v44 = vsel %vm485_vm11, %v470_v31, %v484_v43 }
 0x31a   :  { %487 = vst [vmem:[#allocation2] sm:$0xff] %v486_v44 }
 0x31b   :  { %637 = shalt.err (!%p634_p4)
}
 0x31c   :  { %s638_s15 = scalar_lea.hbm %s827_s7, 128 }
 0x31d   :  { %p639_p5 = scmp.ne.s32.totalorder %s827_s7, %s638_s15  ;;  %p642_p6 = scmp.lt.u32.totalorder %s638_s15, %s827_s7 }
 0x31f   :  { %p644_p7 = pnand %p642_p6, %p639_p5 }
 0x321   :  { %647 = shalt.err (!%p644_p7)
}
 0x322   :  { %497 = dma.vmem_to_hbm [thread:$0]  %s495_s11, 128, %s827_s7, [#allocation3]  }
 0x323   :  { %648 = dma.done.wait [#allocation3], 128  }
 0x324   :  { %649 = vsyncadd [#allocation3], 4294967168 }
 0x325   :  { %501 = vsyncpa [#allocation3], 1 }

</bundles_post_ra>
